<compile_context>
chip_gen: v7x
topology: tpu7x:2x2x1
jax: 0.10.0
libtpu: 0.0.40
codegen_flags: <defaults>
</compile_context>

<pallas_src>
import functools
import math

import jax
import jax.numpy as jnp
from jax.experimental import pallas as pl
from jax.experimental.pallas import tpu as pltpu

_LANES = 128


def _round_up(x, m):
    return (x + m - 1) // m * m


# ---------------------------------------------------------------------------
# Parameter packing (done ONCE, outside the recurrence).
# ---------------------------------------------------------------------------
def _pack_weight(w, in_dim, in_pad, hidden, hp, dtype):
    """(4H, in_dim) PyTorch-layout weight -> (in_pad, 4*Hp) MXU operand."""
    w4 = w.reshape(4, hidden, in_dim).astype(jnp.float32)
    w4 = jnp.pad(w4, ((0, 0), (0, hp - hidden), (0, in_pad - in_dim)))
    # result[k_idx, g*Hp + j] == w[g*H + j, k_idx]
    return jnp.transpose(w4, (2, 0, 1)).reshape(in_pad, 4 * hp).astype(dtype)


def pack_slstm_params(w_ih, w_hh, bias, *, compute_dtype=jnp.bfloat16):
    """Packs sLSTM weights into lane-aligned, MXU-friendly operands.

    Args:
      w_ih: (4H, I), w_hh: (4H, H), bias: (4H,) -- PyTorch layout, gate order
            [i, f, g, o] along the 4H axis.
      compute_dtype: dtype of the matmul operands (bf16 recommended; f32 for
            bit-faithful checks).  Accumulation is always f32.

    Returns a dict with packed arrays and static layout info.
    """
    four_h, input_size = w_ih.shape
    hidden = four_h // 4
    assert w_hh.shape == (four_h, hidden) and bias.shape == (four_h,)

    hp = _round_up(hidden, _LANES)
    ip = _round_up(input_size, _LANES)

    wx = _pack_weight(w_ih, input_size, ip, hidden, hp, compute_dtype)
    wh = _pack_weight(w_hh, hidden, hp, hidden, hp, compute_dtype)
    b_packed = jnp.pad(bias.reshape(4, hidden).astype(jnp.float32),
                       ((0, 0), (0, hp - hidden))).reshape(1, 4 * hp)

    return dict(wx=wx, wh=wh, b=b_packed, hidden=hidden, input_size=input_size,
                hp=hp, ip=ip, compute_dtype=compute_dtype)


# ---------------------------------------------------------------------------
# Kernel: full recurrence over the T ("arbitrary") grid axis.
# ---------------------------------------------------------------------------
def _slstm_seq_kernel(x_ref, h0_ref, c0_ref, wx_ref, wh_ref, b_ref,
                      h_seq_ref, c_fin_ref, h_scr, c_scr,
                      *, hp, compute_dtype):
    """One timestep of sLSTM on one batch tile.

    x_ref    : (1, Bblk, Ip)  compute_dtype  -- current step's input
    h0_ref   : (Bblk, Hp)     f32            -- initial hidden (read at t==0)
    c0_ref   : (Bblk, Hp)     f32            -- initial cell   (read at t==0)
    wx_ref   : (Ip, 4*Hp)     compute_dtype  -- VMEM-resident (constant map)
    wh_ref   : (Hp, 4*Hp)     compute_dtype  -- VMEM-resident (constant map)
    b_ref    : (1, 4*Hp)      f32
    h_seq_ref: (1, Bblk, Hp)  out dtype      -- per-step hidden output
    c_fin_ref: (Bblk, Hp)     f32            -- final cell (written at last t)
    h_scr, c_scr: (Bblk, Hp)  f32 VMEM scratch -- recurrent state carry
    """
    t = pl.program_id(1)

    @pl.when(t == 0)
    def _():
        h_scr[...] = h0_ref[...]
        c_scr[...] = c0_ref[...]

    # Two accumulating MXU passes (x-block and h-block of the packed weights),
    # f32 accumulation.  No [x|h] concat anywhere.
    gates = jnp.dot(x_ref[0], wx_ref[...], preferred_element_type=jnp.float32)
    gates = gates + jnp.dot(h_scr[...].astype(compute_dtype), wh_ref[...],
                            preferred_element_type=jnp.float32)
    gates = gates + b_ref[...]

    # Gate order [i, f, g, o]; every slice is a lane-aligned 128-multiple slab.
    i_gate = jnp.exp(gates[:, 0 * hp:1 * hp])                 # exp input gate
    f_gate = jnp.exp(gates[:, 1 * hp:2 * hp])                 # exp forget gate
    g_gate = jnp.tanh(gates[:, 2 * hp:3 * hp])                # cell candidate
    # sigmoid(z) = 0.5*(tanh(z/2)+1): one EUP op instead of exp + reciprocal.
    o_gate = 0.5 * (jnp.tanh(0.5 * gates[:, 3 * hp:4 * hp]) + 1.0)

    c_new = f_gate * c_scr[...] + i_gate * g_gate             # f32 end-to-end
    h_new = o_gate * jnp.tanh(c_new)

    h_scr[...] = h_new
    c_scr[...] = c_new

    # Lane-dense store, cast to the output dtype inside the kernel.
    h_seq_ref[0] = h_new.astype(h_seq_ref.dtype)

    @pl.when(t == pl.num_programs(1) - 1)
    def _():
        c_fin_ref[...] = c_new


# ---------------------------------------------------------------------------
# Wrappers
# ---------------------------------------------------------------------------
def slstm_sequence(x_seq, h0, c0, params, *, block_b=None):
    """Runs the sLSTM recurrence over a whole sequence in ONE pallas_call.

    Args:
      x_seq: (T, B, I); h0, c0: (B, H); params from pack_slstm_params.

    Returns:
      h_seq: (T, B, H) in h0.dtype;  c_T: (B, H) float32.
    """
    seq_len, batch, input_size = x_seq.shape
    hidden, hp, ip = params["hidden"], params["hp"], params["ip"]
    cdt = params["compute_dtype"]
    out_dtype = h0.dtype
    assert input_size == params["input_size"] and h0.shape == (batch, hidden)

    if block_b is None:
        # On v7x (2 TCs) prefer >=2 batch blocks when batch allows; harmless
        # elsewhere.  Partial final blocks are masked (correct, some waste).
        block_b = batch if batch <= 256 else 256

    # One-time (per sequence, NOT per step) padding / casting glue.
    x_pad = jnp.pad(x_seq, ((0, 0), (0, 0), (0, ip - input_size))).astype(cdt)
    h0_pad = jnp.pad(h0.astype(jnp.float32), ((0, 0), (0, hp - hidden)))
    c0_pad = jnp.pad(c0.astype(jnp.float32), ((0, 0), (0, hp - hidden)))

    nb = pl.cdiv(batch, block_b)
    grid = (nb, seq_len)                      # T innermost ("arbitrary")

    # VMEM budget from actual tile sizes (default double buffering assumed).
    cdt_sz = jnp.dtype(cdt).itemsize
    out_sz = jnp.dtype(out_dtype).itemsize
    need = (2 * block_b * ip * cdt_sz                      # x block
            + 2 * 2 * block_b * hp * 4                     # h0, c0 blocks
            + 2 * (ip + hp) * 4 * hp * cdt_sz              # wx, wh
            + 2 * 4 * hp * 4                               # bias
            + 2 * block_b * hp * out_sz                    # h_seq out block
            + 2 * block_b * hp * 4                         # c_final out block
            + 2 * block_b * hp * 4)                        # h/c scratch
    vmem_limit = int(max(16 * 2**20, min(2 * need, 128 * 2**20)))

    kernel = functools.partial(_slstm_seq_kernel, hp=hp, compute_dtype=cdt)

    h_seq_pad, c_fin_pad = pl.pallas_call(
        kernel,
        out_shape=(
            jax.ShapeDtypeStruct((seq_len, batch, hp), out_dtype),
            jax.ShapeDtypeStruct((batch, hp), jnp.float32),
        ),
        grid=grid,
        in_specs=[
            pl.BlockSpec((1, block_b, ip), lambda b, t: (t, b, 0)),   # x_t
            pl.BlockSpec((block_b, hp), lambda b, t: (b, 0)),         # h0
            pl.BlockSpec((block_b, hp), lambda b, t: (b, 0)),         # c0
            pl.BlockSpec((ip, 4 * hp), lambda b, t: (0, 0)),          # W_x
            pl.BlockSpec((hp, 4 * hp), lambda b, t: (0, 0)),          # W_h
            pl.BlockSpec((1, 4 * hp), lambda b, t: (0, 0)),           # bias
        ],
        out_specs=(
            pl.BlockSpec((1, block_b, hp), lambda b, t: (t, b, 0)),   # h_seq
            pl.BlockSpec((block_b, hp), lambda b, t: (b, 0)),         # c_T
        ),
        scratch_shapes=[
            pltpu.VMEM((block_b, hp), jnp.float32),   # h carry
            pltpu.VMEM((block_b, hp), jnp.float32),   # c carry
        ],
        compiler_params=pltpu.CompilerParams(
            dimension_semantics=("parallel", "arbitrary"),
            vmem_limit_bytes=vmem_limit),
    )(x_pad, h0_pad, c0_pad, params["wx"], params["wh"], params["b"])

    return h_seq_pad[:, :, :hidden], c_fin_pad[:, :hidden]


def slstm_cell(x, h, c, params):
    """One sLSTM cell step (== sLSTMCell.forward).  x:(B,I), h,c:(B,H)."""
    h_seq, c_new = slstm_sequence(x[None], h, c, params)
    return h_seq[0], c_new


# ---------------------------------------------------------------------------
# References & test
# ---------------------------------------------------------------------------
def _xavier_uniform(key, shape):
    fan_out, fan_in = shape
    bound = math.sqrt(6.0 / (fan_in + fan_out))
    return jax.random.uniform(key, shape, jnp.float32, -bound, bound)


def _reference_step(x, h, c, w_ih, w_hh, bias):
    """Pure-JAX f32 mirror of the PyTorch forward."""
    gates = x @ w_ih.T + bias + h @ w_hh.T
    hsz = h.shape[1]
    i, f, g, o = (gates[:, k * hsz:(k + 1) * hsz] for k in range(4))
    c_new = jnp.exp(f) * c + jnp.exp(i) * jnp.tanh(g)
    h_new = jax.nn.sigmoid(o) * jnp.tanh(c_new)
    return h_new, c_new


def _reference_seq_bf16(x_seq, h0, c0, w_ih, w_hh, bias):
    """Step-by-step reference mirroring the kernel's bf16-operand / f32-accum
    arithmetic (for tolerance-tight validation of the bf16 path)."""
    bf16 = jnp.bfloat16
    w_ih_t, w_hh_t = w_ih.T.astype(bf16), w_hh.T.astype(bf16)
    hsz = h0.shape[1]
    h, c, hs = h0, c0, []
    for t in range(x_seq.shape[0]):
        gates = (jnp.dot(x_seq[t].astype(bf16), w_ih_t,
                         preferred_element_type=jnp.float32)
                 + jnp.dot(h.astype(bf16), w_hh_t,
                           preferred_element_type=jnp.float32)
                 + bias)
        i, f, g, o = (gates[:, k * hsz:(k + 1) * hsz] for k in range(4))
        c = jnp.exp(f) * c + jnp.exp(i) * jnp.tanh(g)
        h = 0.5 * (jnp.tanh(0.5 * o) + 1.0) * jnp.tanh(c)
        hs.append(h)
    return jnp.stack(hs), c


if __name__ == "__main__":
    key = jax.random.PRNGKey(0)
    k_x, k_xs, k_h, k_c, k_wih, k_whh, k_b = jax.random.split(key, 7)

    batch, input_size, hidden_size, seq_len = 8, 16, 32, 8

    w_ih = _xavier_uniform(k_wih, (4 * hidden_size, input_size))
    w_hh = _xavier_uniform(k_whh, (4 * hidden_size, hidden_size))
    bias = 0.1 * jax.random.normal(k_b, (4 * hidden_size,), jnp.float32)

    x = jax.random.normal(k_x, (batch, input_size), jnp.float32)
    x_seq = jax.random.normal(k_xs, (seq_len, batch, input_size), jnp.float32)
    h0 = jax.random.normal(k_h, (batch, hidden_size), jnp.float32)
    c0 = jax.random.normal(k_c, (batch, hidden_size), jnp.float32)

    # ---- Test 1: single step (module forward), f32 path, strict check. ----
    params_f32 = jax.block_until_ready(
        pack_slstm_params(w_ih, w_hh, bias, compute_dtype=jnp.float32))
    h1, c1 = slstm_cell(x, h0, c0, params_f32)
    jax.block_until_ready((h1, c1))
    h_ref, c_ref = _reference_step(x, h0, c0, w_ih, w_hh, bias)
    assert jnp.allclose(h1, h_ref, atol=1e-4, rtol=1e-4), \
        f"h max err {float(jnp.max(jnp.abs(h1 - h_ref)))}"
    assert jnp.allclose(c1, c_ref, atol=1e-4, rtol=1e-4), \
        f"c max err {float(jnp.max(jnp.abs(c1 - c_ref)))}"

    # ---- Test 2: fused T-step recurrence, bf16 MXU path. ----
    params_bf16 = jax.block_until_ready(
        pack_slstm_params(w_ih, w_hh, bias, compute_dtype=jnp.bfloat16))
    h_seq, c_T = slstm_sequence(x_seq, h0, c0, params_bf16)
    jax.block_until_ready((h_seq, c_T))
    h_seq_ref, c_T_ref = _reference_seq_bf16(x_seq, h0, c0, w_ih, w_hh, bias)
    assert jnp.allclose(h_seq, h_seq_ref, atol=1e-2, rtol=1e-2), \
        f"h_seq max err {float(jnp.max(jnp.abs(h_seq - h_seq_ref)))}"
    assert jnp.allclose(c_T, c_T_ref, atol=1e-2, rtol=1e-2), \
        f"c_T max err {float(jnp.max(jnp.abs(c_T - c_T_ref)))}"

    print("KERNEL_OK")
</pallas_src>

<mosaic_0001>
module attributes {stable_mosaic.version = 11 : i64} {
  func.func @_slstm_seq_kernel(%arg0: i32, %arg1: i32, %arg2: memref<1x8x128xf32, #tpu.memory_space<vmem>>, %arg3: memref<8x128xf32, #tpu.memory_space<vmem>>, %arg4: memref<8x128xf32, #tpu.memory_space<vmem>>, %arg5: memref<128x512xf32, #tpu.memory_space<vmem>>, %arg6: memref<128x512xf32, #tpu.memory_space<vmem>>, %arg7: memref<1x512xf32, #tpu.memory_space<vmem>>, %arg8: memref<1x8x128xf32, #tpu.memory_space<vmem>>, %arg9: memref<8x128xf32, #tpu.memory_space<vmem>>, %arg10: memref<8x128xf32, #tpu.memory_space<vmem>>, %arg11: memref<8x128xf32, #tpu.memory_space<vmem>>) attributes {dimension_semantics = [#tpu.dimension_semantics<parallel>, #tpu.dimension_semantics<arbitrary>], iteration_bounds = array<i64: 1, 1>, scalar_prefetch = 0 : i64, scratch_operands = 2 : i64, tpu.core_type = #tpu.core_type<tc>, window_params = [{transform_indices = @transform_0, window_bounds = array<i64: 1, 8, 128>}, {transform_indices = @transform_1, window_bounds = array<i64: 8, 128>}, {transform_indices = @transform_2, window_bounds = array<i64: 8, 128>}, {pipeline_mode = #tpu.pipeline_mode<synchronous>, transform_indices = @transform_3, window_bounds = array<i64: 128, 512>}, {pipeline_mode = #tpu.pipeline_mode<synchronous>, transform_indices = @transform_4, window_bounds = array<i64: 128, 512>}, {pipeline_mode = #tpu.pipeline_mode<synchronous>, transform_indices = @transform_5, window_bounds = array<i64: 1, 512>}, {transform_indices = @transform_6, window_bounds = array<i64: 1, 8, 128>}, {transform_indices = @transform_7, window_bounds = array<i64: 8, 128>}]} {
    %c0_i32 = arith.constant 0 : i32
    %0 = arith.cmpi eq, %arg1, %c0_i32 : i32
    %1 = arith.extui %0 : i1 to i32
    %c0_i32_0 = arith.constant 0 : i32
    %2 = arith.cmpi ne, %1, %c0_i32_0 : i32
    scf.if %2 {
      %c0_26 = arith.constant 0 : index
      %c0_27 = arith.constant 0 : index
      %42 = vector.load %arg3[%c0_26, %c0_27] : memref<8x128xf32, #tpu.memory_space<vmem>>, vector<8x128xf32>
      %c0_28 = arith.constant 0 : index
      %c0_29 = arith.constant 0 : index
      %43 = vector.load %arg10[%c0_28, %c0_29] : memref<8x128xf32, #tpu.memory_space<vmem>>, vector<8x128xf32>
      tpu.vector_store %arg10[%c0_28, %c0_29], %42 {strides = array<i32>} : memref<8x128xf32, #tpu.memory_space<vmem>>, vector<8x128xf32>,
      %c0_30 = arith.constant 0 : index
      %c0_31 = arith.constant 0 : index
      %44 = vector.load %arg4[%c0_30, %c0_31] : memref<8x128xf32, #tpu.memory_space<vmem>>, vector<8x128xf32>
      %c0_32 = arith.constant 0 : index
      %c0_33 = arith.constant 0 : index
      %45 = vector.load %arg11[%c0_32, %c0_33] : memref<8x128xf32, #tpu.memory_space<vmem>>, vector<8x128xf32>
      tpu.vector_store %arg11[%c0_32, %c0_33], %44 {strides = array<i32>} : memref<8x128xf32, #tpu.memory_space<vmem>>, vector<8x128xf32>,
    } else {
    }
    %c0 = arith.constant 0 : index
    %c0_1 = arith.constant 0 : index
    %c0_2 = arith.constant 0 : index
    %3 = vector.load %arg2[%c0, %c0_1, %c0_2] : memref<1x8x128xf32, #tpu.memory_space<vmem>>, vector<1x8x128xf32>
    %4 = vector.shape_cast %3 : vector<1x8x128xf32> to vector<8x128xf32>
    %c0_3 = arith.constant 0 : index
    %c0_4 = arith.constant 0 : index
    %5 = vector.load %arg5[%c0_3, %c0_4] : memref<128x512xf32, #tpu.memory_space<vmem>>, vector<128x512xf32>
    %cst = arith.constant dense<0.000000e+00> : vector<8x512xf32>
    %6 = tpu.matmul %4, %5, %cst {dimension_numbers = #tpu.dot_dimension_numbers<[1], [0], [0], [1], [0, 0, 1, 1], [], []>} : vector<8x128xf32>, vector<128x512xf32>, vector<8x512xf32> -> vector<8x512xf32>
    %c0_5 = arith.constant 0 : index
    %c0_6 = arith.constant 0 : index
    %7 = vector.load %arg10[%c0_5, %c0_6] : memref<8x128xf32, #tpu.memory_space<vmem>>, vector<8x128xf32>
    %c0_7 = arith.constant 0 : index
    %c0_8 = arith.constant 0 : index
    %8 = vector.load %arg6[%c0_7, %c0_8] : memref<128x512xf32, #tpu.memory_space<vmem>>, vector<128x512xf32>
    %cst_9 = arith.constant dense<0.000000e+00> : vector<8x512xf32>
    %9 = tpu.matmul %7, %8, %cst_9 {dimension_numbers = #tpu.dot_dimension_numbers<[1], [0], [0], [1], [0, 0, 1, 1], [], []>} : vector<8x128xf32>, vector<128x512xf32>, vector<8x512xf32> -> vector<8x512xf32>
    %10 = arith.addf %6, %9 : vector<8x512xf32>
    %c0_10 = arith.constant 0 : index
    %c0_11 = arith.constant 0 : index
    %11 = vector.load %arg7[%c0_10, %c0_11] : memref<1x512xf32, #tpu.memory_space<vmem>>, vector<1x512xf32>
    %12 = vector.broadcast %11 : vector<1x512xf32> to vector<8x512xf32>
    %13 = arith.addf %10, %12 : vector<8x512xf32>
    %14 = vector.extract_strided_slice %13 {offsets = [0, 0], sizes = [8, 128], strides = [1, 1]} : vector<8x512xf32> to vector<8x128xf32>
    %15 = math.exp %14 : vector<8x128xf32>
    %16 = vector.extract_strided_slice %13 {offsets = [0, 128], sizes = [8, 128], strides = [1, 1]} : vector<8x512xf32> to vector<8x128xf32>
    %17 = math.exp %16 : vector<8x128xf32>
    %18 = vector.extract_strided_slice %13 {offsets = [0, 256], sizes = [8, 128], strides = [1, 1]} : vector<8x512xf32> to vector<8x128xf32>
    %19 = math.tanh %18 : vector<8x128xf32>
    %20 = vector.extract_strided_slice %13 {offsets = [0, 384], sizes = [8, 128], strides = [1, 1]} : vector<8x512xf32> to vector<8x128xf32>
    %cst_12 = arith.constant 5.000000e-01 : f32
    %21 = vector.broadcast %cst_12 : f32 to vector<8x128xf32>
    %22 = arith.mulf %21, %20 : vector<8x128xf32>
    %23 = math.tanh %22 : vector<8x128xf32>
    %cst_13 = arith.constant 1.000000e+00 : f32
    %24 = vector.broadcast %cst_13 : f32 to vector<8x128xf32>
    %25 = arith.addf %23, %24 : vector<8x128xf32>
    %cst_14 = arith.constant 5.000000e-01 : f32
    %26 = vector.broadcast %cst_14 : f32 to vector<8x128xf32>
    %27 = arith.mulf %26, %25 : vector<8x128xf32>
    %c0_15 = arith.constant 0 : index
    %c0_16 = arith.constant 0 : index
    %28 = vector.load %arg11[%c0_15, %c0_16] : memref<8x128xf32, #tpu.memory_space<vmem>>, vector<8x128xf32>
    %29 = arith.mulf %17, %28 : vector<8x128xf32>
    %30 = arith.mulf %15, %19 : vector<8x128xf32>
    %31 = arith.addf %29, %30 : vector<8x128xf32>
    %32 = math.tanh %31 : vector<8x128xf32>
    %33 = arith.mulf %27, %32 : vector<8x128xf32>
    %c0_17 = arith.constant 0 : index
    %c0_18 = arith.constant 0 : index
    %34 = vector.load %arg10[%c0_17, %c0_18] : memref<8x128xf32, #tpu.memory_space<vmem>>, vector<8x128xf32>
    tpu.vector_store %arg10[%c0_17, %c0_18], %33 {strides = array<i32>} : memref<8x128xf32, #tpu.memory_space<vmem>>, vector<8x128xf32>,
    %c0_19 = arith.constant 0 : index
    %c0_20 = arith.constant 0 : index
    %35 = vector.load %arg11[%c0_19, %c0_20] : memref<8x128xf32, #tpu.memory_space<vmem>>, vector<8x128xf32>
    tpu.vector_store %arg11[%c0_19, %c0_20], %31 {strides = array<i32>} : memref<8x128xf32, #tpu.memory_space<vmem>>, vector<8x128xf32>,
    %c0_21 = arith.constant 0 : index
    %c0_22 = arith.constant 0 : index
    %c0_23 = arith.constant 0 : index
    %36 = vector.load %arg8[%c0_21, %c0_22, %c0_23] : memref<1x8x128xf32, #tpu.memory_space<vmem>>, vector<1x8x128xf32>
    %37 = vector.shape_cast %36 : vector<1x8x128xf32> to vector<8x128xf32>
    %38 = vector.shape_cast %33 : vector<8x128xf32> to vector<1x8x128xf32>
    tpu.vector_store %arg8[%c0_21, %c0_22, %c0_23], %38 {strides = array<i32>} : memref<1x8x128xf32, #tpu.memory_space<vmem>>, vector<1x8x128xf32>,
    %c0_i32_24 = arith.constant 0 : i32
    %39 = arith.cmpi eq, %arg1, %c0_i32_24 : i32
    %40 = arith.extui %39 : i1 to i32
    %c0_i32_25 = arith.constant 0 : i32
    %41 = arith.cmpi ne, %40, %c0_i32_25 : i32
    scf.if %41 {
      %c0_26 = arith.constant 0 : index
      %c0_27 = arith.constant 0 : index
      %42 = vector.load %arg9[%c0_26, %c0_27] : memref<8x128xf32, #tpu.memory_space<vmem>>, vector<8x128xf32>
      tpu.vector_store %arg9[%c0_26, %c0_27], %31 {strides = array<i32>} : memref<8x128xf32, #tpu.memory_space<vmem>>, vector<8x128xf32>,
    } else {
    }
    return
  }
  func.func @transform_0(%arg0: i32, %arg1: i32) -> (i32, i32, i32) {
    %c0_i32 = arith.constant 0 : i32
    %c0_i32_0 = arith.constant 0 : i32
    return %arg1, %arg0, %c0_i32 : i32, i32, i32
  }
  func.func @transform_1(%arg0: i32, %arg1: i32) -> (i32, i32) {
    %c0_i32 = arith.constant 0 : i32
    %c0_i32_0 = arith.constant 0 : i32
    return %arg0, %c0_i32 : i32, i32
  }
  func.func @transform_2(%arg0: i32, %arg1: i32) -> (i32, i32) {
    %c0_i32 = arith.constant 0 : i32
    %c0_i32_0 = arith.constant 0 : i32
    return %arg0, %c0_i32 : i32, i32
  }
  func.func @transform_3(%arg0: i32, %arg1: i32) -> (i32, i32) {
    %c0_i32 = arith.constant 0 : i32
    %c0_i32_0 = arith.constant 0 : i32
    %c0_i32_1 = arith.constant 0 : i32
    return %c0_i32, %c0_i32_0 : i32, i32
  }
  func.func @transform_4(%arg0: i32, %arg1: i32) -> (i32, i32) {
    %c0_i32 = arith.constant 0 : i32
    %c0_i32_0 = arith.constant 0 : i32
    %c0_i32_1 = arith.constant 0 : i32
    return %c0_i32, %c0_i32_0 : i32, i32
  }
  func.func @transform_5(%arg0: i32, %arg1: i32) -> (i32, i32) {
    %c0_i32 = arith.constant 0 : i32
    %c0_i32_0 = arith.constant 0 : i32
    %c0_i32_1 = arith.constant 0 : i32
    return %c0_i32, %c0_i32_0 : i32, i32
  }
  func.func @transform_6(%arg0: i32, %arg1: i32) -> (i32, i32, i32) {
    %c0_i32 = arith.constant 0 : i32
    %c0_i32_0 = arith.constant 0 : i32
    return %arg1, %arg0, %c0_i32 : i32, i32, i32
  }
  func.func @transform_7(%arg0: i32, %arg1: i32) -> (i32, i32) {
    %c0_i32 = arith.constant 0 : i32
    %c0_i32_0 = arith.constant 0 : i32
    return %arg0, %c0_i32 : i32, i32
  }
}

</mosaic_0001>

<bundles_post_ra>
// kernel: tpu_custom_call.1
= control target key start
LH: loop header
LB: loop body
LE: loop exit
PB: predicated region body
PF: predicated region fallthrough
CT: control target
= control target key end

     0   :  { %13 = vsyncpa [#allocation5], 0  ;;  %s1060_s0 = inlined_call_operand.hbm [shape: f32[1,8,128], index: 0, kind: input, shape index: {}]   ;;  %s1061_s1 = inlined_call_operand.hbm [shape: f32[8,128], index: 1, kind: input, shape index: {}]   ;;  %s1062_s2 = inlined_call_operand.hbm [shape: f32[8,128], index: 2, kind: input, shape index: {}]   ;;  %s1063_s3 = inlined_call_operand.hbm [shape: f32[128,512], index: 3, kind: input, shape index: {}]   ;;  %s1064_s4 = inlined_call_operand.hbm [shape: f32[128,512], index: 4, kind: input, shape index: {}]   ;;  %s1065_s5 = inlined_call_operand.vmem [shape: f32[1,512], index: 5, kind: input, shape index: {}]   ;;  %s1066_s6 = inlined_call_operand.hbm [shape: f32[1,8,128], index: 6, kind: output, shape index: {0}]   ;;  %s1067_s7 = inlined_call_operand.hbm [shape: f32[8,128], index: 7, kind: output, shape index: {1}]  }
   0x1   :  { %14 = vsyncpa [#allocation8], 0 }
   0x2   :  { %15 = vsyncpa [#allocation11], 0 }
   0x3   :  { %16 = vsyncpa [#allocation6], 0 }
   0x4   :  { %17 = vsyncpa [#allocation15], 0  ;;  %s906_s24 = smov [#allocation7]   ;;  %s907_s26 = smov [#allocation10]  }
   0x5   :  { %s34_s25 = sshll.u32 %s906_s24, 4  ;;  %s53_s27 = sshll.u32 %s907_s26, 4  ;;  %s35_s25 = int_to_ptr.vmem [resolvable:$true] %s34_s25  ;;  %s956_s27 = int_to_ptr.vmem [resolvable:$true] %s53_s27 }
   0x6   :  { %s742_s30 = scalar_lea.hbm %s1061_s1, 128 }
   0x7   :  { %p743_p0 = scmp.ne.s32.totalorder %s1061_s1, %s742_s30  ;;  %p746_p1 = scmp.lt.u32.totalorder %s742_s30, %s1061_s1 }
   0x9   :  { %p748_p2 = pnand %p746_p1, %p743_p0 }
   0xb   :  { %751 = shalt.err (!%p748_p2)
}
   0xc   :  { %s752_s12 = scalar_lea.vmem %s35_s25, 128  ;;  %p757_p4 = scmp.lt.s32.totalorder %s35_s25, %s35_s25 }
   0xd   :  { %p753_p3 = scmp.ne.s32.totalorder %s35_s25, %s752_s12  ;;  %p758_p5 = scmp.lt.s32.totalorder %s752_s12, %s752_s12 }
   0xf   :  { %p759_p6 = por %p758_p5, %p757_p4 }
  0x11   :  { %p760_p7 = pnand %p759_p6, %p753_p3 }
  0x13   :  { %763 = shalt.err (!%p760_p7)
}
  0x14   :  { %37 = dma.hbm_to_vmem [thread:$0]  %s1061_s1, 128, %s35_s25, [#allocation8]  }
  0x15   :  { %s764_s17 = scalar_lea.hbm %s1063_s3, 8192 }
  0x16   :  { %p765_p8 = scmp.ne.s32.totalorder %s1063_s3, %s764_s17  ;;  %p768_p9 = scmp.lt.u32.totalorder %s764_s17, %s1063_s3 }
  0x18   :  { %p770_p10 = pnand %p768_p9, %p765_p8 }
  0x1a   :  { %773 = shalt.err (!%p770_p10)
}
  0x1b   :  { %s774_s22 = scalar_lea.vmem %s956_s27, 8192  ;;  %p779_p12 = scmp.lt.s32.totalorder %s956_s27, %s956_s27 }
  0x1c   :  { %p775_p11 = scmp.ne.s32.totalorder %s956_s27, %s774_s22  ;;  %p780_p13 = scmp.lt.s32.totalorder %s774_s22, %s774_s22 }
  0x1e   :  { %p781_p0 = por %p780_p13, %p779_p12 }
  0x20   :  { %p782_p1 = pnand %p781_p0, %p775_p11 }
  0x22   :  { %785 = shalt.err (!%p782_p1)
}
  0x23   :  { %s908_s1 = smov 512   ;;  %s909_s23 = smov 32  }
  0x24   :  { %59 = dma.hbm_to_vmem [thread:$0]  %s1063_s3, 8192, %s956_s27, [#allocation11], %s908_s1, %s908_s1, %s909_s23  }
  0x25   :  { %s910_s26 = smov [#allocation4]   ;;  %s911_s29 = smov [#allocation9]  }
  0x26   :  { %s24_s28 = sshll.u32 %s910_s26, 4  ;;  %s44_s30 = sshll.u32 %s911_s29, 4  ;;  %s25_s28 = int_to_ptr.vmem [resolvable:$true] %s24_s28  ;;  %s45_s30 = int_to_ptr.vmem [resolvable:$true] %s44_s30 }
  0x27   :  { %s786_s10 = scalar_lea.hbm %s1060_s0, 128 }
  0x28   :  { %p787_p2 = scmp.ne.s32.totalorder %s1060_s0, %s786_s10  ;;  %p790_p3 = scmp.lt.u32.totalorder %s786_s10, %s1060_s0 }
  0x2a   :  { %p792_p4 = pnand %p790_p3, %p787_p2 }
  0x2c   :  { %795 = shalt.err (!%p792_p4)
}
  0x2d   :  { %s796_s3 = scalar_lea.vmem %s25_s28, 128  ;;  %p801_p6 = scmp.lt.s32.totalorder %s25_s28, %s25_s28 }
  0x2e   :  { %p797_p5 = scmp.ne.s32.totalorder %s25_s28, %s796_s3  ;;  %p802_p7 = scmp.lt.s32.totalorder %s796_s3, %s796_s3 }
  0x30   :  { %p803_p8 = por %p802_p7, %p801_p6 }
  0x32   :  { %p804_p9 = pnand %p803_p8, %p797_p5 }
  0x34   :  { %807 = shalt.err (!%p804_p9)
}
  0x35   :  { %27 = dma.hbm_to_vmem [thread:$0]  %s1060_s0, 128, %s25_s28, [#allocation5]  }
  0x36   :  { %s808_s18 = scalar_lea.hbm %s1062_s2, 128 }
  0x37   :  { %p809_p10 = scmp.ne.s32.totalorder %s1062_s2, %s808_s18  ;;  %p812_p11 = scmp.lt.u32.totalorder %s808_s18, %s1062_s2 }
  0x39   :  { %p814_p12 = pnand %p812_p11, %p809_p10 }
  0x3b   :  { %817 = shalt.err (!%p814_p12)
}
  0x3c   :  { %s818_s24 = scalar_lea.vmem %s45_s30, 128  ;;  %p823_p0 = scmp.lt.s32.totalorder %s45_s30, %s45_s30 }
  0x3d   :  { %p819_p13 = scmp.ne.s32.totalorder %s45_s30, %s818_s24  ;;  %p824_p1 = scmp.lt.s32.totalorder %s818_s24, %s818_s24 }
  0x3f   :  { %p825_p2 = por %p824_p1, %p823_p0 }
  0x41   :  { %p826_p3 = pnand %p825_p2, %p819_p13 }
  0x43   :  { %829 = shalt.err (!%p826_p3)
}
  0x44   :  { %47 = dma.hbm_to_vmem [thread:$0]  %s1062_s2, 128, %s45_s30, [#allocation8]  }
  0x45   :  { %s912_s26 = smov [#allocation12]   ;;  %s830_s9 = scalar_lea.hbm %s1064_s4, 8192 }
  0x46   :  { %s65_s28 = sshll.u32 %s912_s26, 4  ;;  %p831_p4 = scmp.ne.s32.totalorder %s1064_s4, %s830_s9  ;;  %s66_s28 = int_to_ptr.vmem [resolvable:$true] %s65_s28 }
  0x47   :  { %p834_p5 = scmp.lt.u32.totalorder %s830_s9, %s1064_s4 }
  0x49   :  { %p836_p6 = pnand %p834_p5, %p831_p4 }
  0x4b   :  { %839 = shalt.err (!%p836_p6)
}
  0x4c   :  { %s840_s14 = scalar_lea.vmem %s66_s28, 8192  ;;  %p845_p8 = scmp.lt.s32.totalorder %s66_s28, %s66_s28 }
  0x4d   :  { %p841_p7 = scmp.ne.s32.totalorder %s66_s28, %s840_s14  ;;  %p846_p9 = scmp.lt.s32.totalorder %s840_s14, %s840_s14 }
  0x4f   :  { %p847_p10 = por %p846_p9, %p845_p8 }
  0x51   :  { %p848_p11 = pnand %p847_p10, %p841_p7 }
  0x53   :  { %851 = shalt.err (!%p848_p11)
}
  0x54   :  { %71 = dma.hbm_to_vmem [thread:$0]  %s1064_s4, 8192, %s66_s28, [#allocation11], %s908_s1, %s908_s1, %s909_s23  }
  0x55   :  { %896 = dma.done.wait [#allocation5], 128  }
  0x56   :  { %897 = vsyncadd [#allocation5], 4294967168 }
  0x57   :  { %898 = dma.done.wait [#allocation8], 256  }
  0x58   :  { %899 = vsyncadd [#allocation8], 4294967040 }
  0x59   :  { %900 = dma.done.wait [#allocation11], 16384  }
  0x5a   :  { %901 = vsyncadd [#allocation11], 4294950912  ;;  %v913_v0 = vmov 0.0   ;;  %v164_v1 = vld [vmem:[#allocation12 + $0x8] sm:$0xff]  ;;  %v166_v3 = vld [vmem:[#allocation12 + $0x18] sm:$0xff] }
  0x5b   :  { %291 = vmatprep.mubr.f32.mxu0 %v913_v0  ;;  %362 = vmatprep.mubr.f32.mxu1 %v913_v0  ;;  %v168_v2 = vld [vmem:[#allocation12 + $0x28] sm:$0xff]  ;;  %v170_v5 = vld [vmem:[#allocation12 + $0x38] sm:$0xff]  ;;  %v163_v6 = vld [vmem:[#allocation12] sm:$0xff] }
  0x5c   :  { %v590_v4 = vpack.c.bf16 %v168_v2, %v164_v1  ;;  %v167_v7 = vld [vmem:[#allocation12 + $0x20] sm:$0xff]  ;;  %v622_v8 = vpack.c.bf16 %v170_v5, %v166_v3  ;;  %v165_v10 = vld [vmem:[#allocation12 + $0x10] sm:$0xff]  ;;  %v172_v12 = vld [vmem:[#allocation12 + $0x48] sm:$0xff] }
  0x5d   :  { %v592_v9 = vpack.c.bf16 %v167_v7, %v163_v6  ;;  %v169_v11 = vld [vmem:[#allocation12 + $0x30] sm:$0xff]  ;;  %v176_v14 = vld [vmem:[#allocation12 + $0x68] sm:$0xff]  ;;  %v174_v15 = vld [vmem:[#allocation12 + $0x58] sm:$0xff] }
  0x5e   :  { %591 = vmatprep.subr.bf16.mxu0 %v590_v4  ;;  %v624_v13 = vpack.c.bf16 %v169_v11, %v165_v10  ;;  %v178_v16 = vld [vmem:[#allocation12 + $0x78] sm:$0xff]  ;;  %623 = vmatprep.subr.bf16.mxu1 %v622_v8  ;;  %v594_v17 = vpack.c.bf16 %v176_v14, %v172_v12  ;;  %v171_v19 = vld [vmem:[#allocation12 + $0x40] sm:$0xff]  ;;  %v173_v21 = vld [vmem:[#allocation12 + $0x50] sm:$0xff] }
  0x5f   :  { %593 = vmatpush1.bf16.msra.mxu0 %v592_v9  ;;  %v626_v18 = vpack.c.bf16 %v178_v16, %v174_v15  ;;  %v175_v20 = vld [vmem:[#allocation12 + $0x60] sm:$0xff]  ;;  %v177_v23 = vld [vmem:[#allocation12 + $0x70] sm:$0xff]  ;;  %v180_v24 = vld [vmem:[#allocation12 + $0x88] sm:$0xff] }
  0x60   :  { %625 = vmatpush1.bf16.msra.mxu1 %v624_v13  ;;  %v596_v22 = vpack.c.bf16 %v175_v20, %v171_v19  ;;  %v184_v25 = vld [vmem:[#allocation12 + $0xa8] sm:$0xff]  ;;  %595 = vmatprep.subr.bf16.mxu0 %v594_v17  ;;  %v628_v26 = vpack.c.bf16 %v177_v23, %v173_v21  ;;  %v182_v28 = vld [vmem:[#allocation12 + $0x98] sm:$0xff]  ;;  %v179_v30 = vld [vmem:[#allocation12 + $0x80] sm:$0xff] }
  0x61   :  { %627 = vmatprep.subr.bf16.mxu1 %v626_v18  ;;  %v598_v27 = vpack.c.bf16 %v184_v25, %v180_v24  ;;  %v186_v29 = vld [vmem:[#allocation12 + $0xb8] sm:$0xff]  ;;  %v183_v32 = vld [vmem:[#allocation12 + $0xa0] sm:$0xff]  ;;  %v181_v33 = vld [vmem:[#allocation12 + $0x90] sm:$0xff] }
  0x62   :  { %v630_v31 = vpack.c.bf16 %v186_v29, %v182_v28  ;;  %v185_v34 = vld [vmem:[#allocation12 + $0xb0] sm:$0xff]  ;;  %v600_v35 = vpack.c.bf16 %v183_v32, %v179_v30  ;;  %v188_v36 = vld [vmem:[#allocation12 + $0xc8] sm:$0xff]  ;;  %v190_v38 = vld [vmem:[#allocation12 + $0xd8] sm:$0xff] }
  0x63   :  { %597 = vmatpush1.bf16.msra.mxu0 %v596_v22  ;;  %v192_v37 = vld [vmem:[#allocation12 + $0xe8] sm:$0xff]  ;;  %v632_v39 = vpack.c.bf16 %v185_v34, %v181_v33  ;;  %v194_v41 = vld [vmem:[#allocation12 + $0xf8] sm:$0xff]  ;;  %v187_v42 = vld [vmem:[#allocation12 + $0xc0] sm:$0xff] }
  0x64   :  { %629 = vmatpush1.bf16.msra.mxu1 %v628_v26  ;;  %599 = vmatprep.subr.bf16.mxu0 %v598_v27  ;;  %v602_v40 = vpack.c.bf16 %v192_v37, %v188_v36  ;;  %v191_v43 = vld [vmem:[#allocation12 + $0xe0] sm:$0xff]  ;;  %v634_v44 = vpack.c.bf16 %v194_v41, %v190_v38  ;;  %v189_v45 = vld [vmem:[#allocation12 + $0xd0] sm:$0xff]  ;;  %v196_v47 = vld [vmem:[#allocation12 + $0x108] sm:$0xff] }
  0x65   :  { %631 = vmatprep.subr.bf16.mxu1 %v630_v31  ;;  %v193_v46 = vld [vmem:[#allocation12 + $0xf0] sm:$0xff]  ;;  %v200_v48 = vld [vmem:[#allocation12 + $0x128] sm:$0xff]  ;;  %v198_v49 = vld [vmem:[#allocation12 + $0x118] sm:$0xff]  ;;  %v604_v51 = vpack.c.bf16 %v191_v43, %v187_v42 }
  0x66   :  { %v202_v50 = vld [vmem:[#allocation12 + $0x138] sm:$0xff]  ;;  %v636_v52 = vpack.c.bf16 %v193_v46, %v189_v45  ;;  %v606_v53 = vpack.c.bf16 %v200_v48, %v196_v47  ;;  %v195_v54 = vld [vmem:[#allocation12 + $0x100] sm:$0xff]  ;;  %v197_v56 = vld [vmem:[#allocation12 + $0x110] sm:$0xff] }
  0x67   :  { %601 = vmatpush1.bf16.msra.mxu0 %v600_v35  ;;  %v199_v55 = vld [vmem:[#allocation12 + $0x120] sm:$0xff]  ;;  %v638_v57 = vpack.c.bf16 %v202_v50, %v198_v49  ;;  %v201_v58 = vld [vmem:[#allocation12 + $0x130] sm:$0xff]  ;;  %v204_v59 = vld [vmem:[#allocation12 + $0x148] sm:$0xff] }
  0x68   :  { %633 = vmatpush1.bf16.msra.mxu1 %v632_v39  ;;  %603 = vmatprep.subr.bf16.mxu0 %v602_v40  ;;  %v208_v60 = vld [vmem:[#allocation12 + $0x168] sm:$0xff]  ;;  %v206_v61 = vld [vmem:[#allocation12 + $0x158] sm:$0xff]  ;;  %v608_v63 = vpack.c.bf16 %v199_v55, %v195_v54  ;;  %v640_v1 = vpack.c.bf16 %v201_v58, %v197_v56  ;;  %v203_v3 = vld [vmem:[#allocation12 + $0x140] sm:$0xff] }
  0x69   :  { %635 = vmatprep.subr.bf16.mxu1 %v634_v44  ;;  %v210_v62 = vld [vmem:[#allocation12 + $0x178] sm:$0xff]  ;;  %v610_v2 = vpack.c.bf16 %v208_v60, %v204_v59  ;;  %v207_v4 = vld [vmem:[#allocation12 + $0x160] sm:$0xff]  ;;  %v205_v5 = vld [vmem:[#allocation12 + $0x150] sm:$0xff] }
  0x6a   :  { %v642_v6 = vpack.c.bf16 %v210_v62, %v206_v61  ;;  %v209_v7 = vld [vmem:[#allocation12 + $0x170] sm:$0xff]  ;;  %v212_v8 = vld [vmem:[#allocation12 + $0x188] sm:$0xff]  ;;  %v214_v10 = vld [vmem:[#allocation12 + $0x198] sm:$0xff]  ;;  %v612_v12 = vpack.c.bf16 %v207_v4, %v203_v3 }
  0x6b   :  { %605 = vmatpush1.bf16.msra.mxu0 %v604_v51  ;;  %v216_v9 = vld [vmem:[#allocation12 + $0x1a8] sm:$0xff]  ;;  %v218_v11 = vld [vmem:[#allocation12 + $0x1b8] sm:$0xff]  ;;  %v644_v13 = vpack.c.bf16 %v209_v7, %v205_v5  ;;  %v211_v15 = vld [vmem:[#allocation12 + $0x180] sm:$0xff] }
  0x6c   :  { %637 = vmatpush1.bf16.msra.mxu1 %v636_v52  ;;  %607 = vmatprep.subr.bf16.mxu0 %v606_v53  ;;  %v614_v14 = vpack.c.bf16 %v216_v9, %v212_v8  ;;  %v215_v16 = vld [vmem:[#allocation12 + $0x1a0] sm:$0xff]  ;;  %v213_v17 = vld [vmem:[#allocation12 + $0x190] sm:$0xff]  ;;  %v646_v18 = vpack.c.bf16 %v218_v11, %v214_v10  ;;  %v220_v20 = vld [vmem:[#allocation12 + $0x1c8] sm:$0xff] }
  0x6d   :  { %639 = vmatprep.subr.bf16.mxu1 %v638_v57  ;;  %v217_v19 = vld [vmem:[#allocation12 + $0x1b0] sm:$0xff]  ;;  %v224_v21 = vld [vmem:[#allocation12 + $0x1e8] sm:$0xff]  ;;  %v222_v22 = vld [vmem:[#allocation12 + $0x1d8] sm:$0xff]  ;;  %v616_v24 = vpack.c.bf16 %v215_v16, %v211_v15 }
  0x6e   :  { %v226_v23 = vld [vmem:[#allocation12 + $0x1f8] sm:$0xff]  ;;  %v648_v25 = vpack.c.bf16 %v217_v19, %v213_v17  ;;  %v618_v26 = vpack.c.bf16 %v224_v21, %v220_v20  ;;  %v219_v27 = vld [vmem:[#allocation12 + $0x1c0] sm:$0xff]  ;;  %v221_v29 = vld [vmem:[#allocation12 + $0x1d0] sm:$0xff] }
  0x6f   :  { %609 = vmatpush1.bf16.msra.mxu0 %v608_v63  ;;  %v223_v28 = vld [vmem:[#allocation12 + $0x1e0] sm:$0xff]  ;;  %v650_v30 = vpack.c.bf16 %v226_v23, %v222_v22  ;;  %v225_v31 = vld [vmem:[#allocation12 + $0x1f0] sm:$0xff]  ;;  %v99_v32 = vld [vmem:[#allocation10 + $0x8] sm:$0xff] }
  0x70   :  { %641 = vmatpush1.bf16.msra.mxu1 %v640_v1  ;;  %611 = vmatprep.subr.bf16.mxu0 %v610_v2  ;;  %v103_v33 = vld [vmem:[#allocation10 + $0x28] sm:$0xff]  ;;  %v101_v34 = vld [vmem:[#allocation10 + $0x18] sm:$0xff]  ;;  %v620_v36 = vpack.c.bf16 %v223_v28, %v219_v27  ;;  %v652_v37 = vpack.c.bf16 %v225_v31, %v221_v29  ;;  %v98_v39 = vld [vmem:[#allocation10] sm:$0xff] }
  0x71   :  { %643 = vmatprep.subr.bf16.mxu1 %v642_v6  ;;  %v105_v35 = vld [vmem:[#allocation10 + $0x38] sm:$0xff]  ;;  %v654_v38 = vpack.c.bf16 %v103_v33, %v99_v32  ;;  %v102_v40 = vld [vmem:[#allocation10 + $0x20] sm:$0xff]  ;;  %v100_v41 = vld [vmem:[#allocation10 + $0x10] sm:$0xff] }
  0x72   :  { %v686_v42 = vpack.c.bf16 %v105_v35, %v101_v34  ;;  %v104_v43 = vld [vmem:[#allocation10 + $0x30] sm:$0xff]  ;;  %v107_v44 = vld [vmem:[#allocation10 + $0x48] sm:$0xff]  ;;  %v109_v46 = vld [vmem:[#allocation10 + $0x58] sm:$0xff]  ;;  %v656_v49 = vpack.c.bf16 %v102_v40, %v98_v39 }
  0x73   :  { %613 = vmatpush1.bf16.msra.mxu0 %v612_v12  ;;  %v111_v45 = vld [vmem:[#allocation10 + $0x68] sm:$0xff]  ;;  %v113_v47 = vld [vmem:[#allocation10 + $0x78] sm:$0xff]  ;;  %v93_v48 = vld [vmem:[#allocation7] sm:$0xff]  ;;  %v688_v50 = vpack.c.bf16 %v104_v43, %v100_v41 }
  0x74   :  { %645 = vmatpush1.bf16.msra.mxu1 %v644_v13  ;;  %615 = vmatprep.subr.bf16.mxu0 %v614_v14  ;;  %v658_v51 = vpack.c.bf16 %v111_v45, %v107_v44  ;;  %v106_v52 = vld [vmem:[#allocation10 + $0x40] sm:$0xff]  ;;  %v108_v54 = vld [vmem:[#allocation10 + $0x50] sm:$0xff]  ;;  %v690_v55 = vpack.c.bf16 %v113_v47, %v109_v46  ;;  %v115_v57 = vld [vmem:[#allocation10 + $0x88] sm:$0xff] }
  0x75   :  { %647 = vmatprep.subr.bf16.mxu1 %v646_v18  ;;  %v110_v53 = vld [vmem:[#allocation10 + $0x60] sm:$0xff]  ;;  %v112_v56 = vld [vmem:[#allocation10 + $0x70] sm:$0xff]  ;;  %v119_v58 = vld [vmem:[#allocation10 + $0xa8] sm:$0xff] }
  0x76   :  { %v117_v59 = vld [vmem:[#allocation10 + $0x98] sm:$0xff]  ;;  %v660_v61 = vpack.c.bf16 %v110_v53, %v106_v52  ;;  %v692_v62 = vpack.c.bf16 %v112_v56, %v108_v54  ;;  %v662_v63 = vpack.c.bf16 %v119_v58, %v115_v57  ;;  %v114_v1 = vld [vmem:[#allocation10 + $0x80] sm:$0xff]  ;;  %v116_v3 = vld [vmem:[#allocation10 + $0x90] sm:$0xff] }
  0x77   :  { %617 = vmatpush1.bf16.msra.mxu0 %v616_v24  ;;  %v121_v60 = vld [vmem:[#allocation10 + $0xb8] sm:$0xff]  ;;  %v118_v2 = vld [vmem:[#allocation10 + $0xa0] sm:$0xff]  ;;  %v120_v5 = vld [vmem:[#allocation10 + $0xb0] sm:$0xff] }
  0x78   :  { %649 = vmatpush1.bf16.msra.mxu1 %v648_v25  ;;  %619 = vmatprep.subr.bf16.mxu0 %v618_v26  ;;  %v694_v4 = vpack.c.bf16 %v121_v60, %v117_v59  ;;  %v123_v6 = vld [vmem:[#allocation10 + $0xc8] sm:$0xff]  ;;  %v125_v8 = vld [vmem:[#allocation10 + $0xd8] sm:$0xff]  ;;  %v664_v10 = vpack.c.bf16 %v118_v2, %v114_v1  ;;  %v696_v11 = vpack.c.bf16 %v120_v5, %v116_v3  ;;  %v122_v13 = vld [vmem:[#allocation10 + $0xc0] sm:$0xff]  ;;  %v513_v5 = vlaneseq }
  0x79   :  { %651 = vmatprep.subr.bf16.mxu1 %v650_v30  ;;  %v127_v7 = vld [vmem:[#allocation10 + $0xe8] sm:$0xff]  ;;  %v129_v9 = vld [vmem:[#allocation10 + $0xf8] sm:$0xff]  ;;  %v126_v14 = vld [vmem:[#allocation10 + $0xe0] sm:$0xff] }
  0x7a   :  { %v666_v12 = vpack.c.bf16 %v127_v7, %v123_v6  ;;  %v124_v15 = vld [vmem:[#allocation10 + $0xd0] sm:$0xff]  ;;  %v698_v16 = vpack.c.bf16 %v129_v9, %v125_v8  ;;  %v131_v18 = vld [vmem:[#allocation10 + $0x108] sm:$0xff]  ;;  %v133_v20 = vld [vmem:[#allocation10 + $0x118] sm:$0xff]  ;;  %v668_v22 = vpack.c.bf16 %v126_v14, %v122_v13  ;;  %v514_v6 = vshrl.u32 %v513_v5, 7 }
  0x7b   :  { %621 = vmatpush1.bf16.msra.mxu0 %v620_v36  ;;  %v128_v17 = vld [vmem:[#allocation10 + $0xf0] sm:$0xff]  ;;  %v135_v19 = vld [vmem:[#allocation10 + $0x128] sm:$0xff]  ;;  %v137_v21 = vld [vmem:[#allocation10 + $0x138] sm:$0xff] }
  0x7c   :  { %653 = vmatpush1.bf16.msra.mxu1 %v652_v37  ;;  %655 = vmatprep.subr.bf16.mxu0 %v654_v38  ;;  %v670_v23 = vpack.c.bf16 %v135_v19, %v131_v18  ;;  %v130_v24 = vld [vmem:[#allocation10 + $0x100] sm:$0xff]  ;;  %v132_v26 = vld [vmem:[#allocation10 + $0x110] sm:$0xff]  ;;  %v702_v27 = vpack.c.bf16 %v137_v21, %v133_v20  ;;  %v139_v29 = vld [vmem:[#allocation10 + $0x148] sm:$0xff]  ;;  %v515_v7 = vsub.s32 0, %v514_v6  ;;  %v523_v9 = vsub.s32 2, %v514_v6 }
  0x7d   :  { %687 = vmatprep.subr.bf16.mxu1 %v686_v42  ;;  %v134_v25 = vld [vmem:[#allocation10 + $0x120] sm:$0xff]  ;;  %v136_v28 = vld [vmem:[#allocation10 + $0x130] sm:$0xff]  ;;  %v143_v30 = vld [vmem:[#allocation10 + $0x168] sm:$0xff] }
  0x7e   :  { %292 = vmatmul.mubr.f32.vlgmr.msra.gmra.mrb[0].mxu0 %v93_v48  ;;  %v141_v31 = vld [vmem:[#allocation10 + $0x158] sm:$0xff]  ;;  %v672_v33 = vpack.c.bf16 %v134_v25, %v130_v24  ;;  %v704_v34 = vpack.c.bf16 %v136_v28, %v132_v26  ;;  %v674_v35 = vpack.c.bf16 %v143_v30, %v139_v29  ;;  %v138_v36 = vld [vmem:[#allocation10 + $0x140] sm:$0xff]  ;;  %v140_v38 = vld [vmem:[#allocation10 + $0x150] sm:$0xff] }
  0x7f   :  { %363 = vmatmul.mubr.f32.vlgmr.msra.gmra.mrb[0].mxu1 %v93_v48  ;;  %657 = vmatpush1.bf16.msra.mxu0 %v656_v49  ;;  %v145_v32 = vld [vmem:[#allocation10 + $0x178] sm:$0xff]  ;;  %v142_v37 = vld [vmem:[#allocation10 + $0x160] sm:$0xff]  ;;  %v144_v40 = vld [vmem:[#allocation10 + $0x170] sm:$0xff] }
  0x80   :  { %689 = vmatpush1.bf16.msra.mxu1 %v688_v50  ;;  %659 = vmatprep.subr.bf16.mxu0 %v658_v51  ;;  %v706_v39 = vpack.c.bf16 %v145_v32, %v141_v31  ;;  %v147_v41 = vld [vmem:[#allocation10 + $0x188] sm:$0xff]  ;;  %v149_v43 = vld [vmem:[#allocation10 + $0x198] sm:$0xff]  ;;  %v676_v45 = vpack.c.bf16 %v142_v37, %v138_v36  ;;  %v708_v46 = vpack.c.bf16 %v144_v40, %v140_v38  ;;  %v146_v48 = vld [vmem:[#allocation10 + $0x180] sm:$0xff] }
  0x81   :  { %691 = vmatprep.subr.bf16.mxu1 %v690_v55  ;;  %433 = vmatprep.mubr.f32.mxu0 %v913_v0  ;;  %v151_v42 = vld [vmem:[#allocation10 + $0x1a8] sm:$0xff]  ;;  %v153_v44 = vld [vmem:[#allocation10 + $0x1b8] sm:$0xff]  ;;  %v150_v49 = vld [vmem:[#allocation10 + $0x1a0] sm:$0xff] }
  0x82   :  { %504 = vmatprep.mubr.f32.mxu1 %v913_v0  ;;  %v700_v0 = vpack.c.bf16 %v128_v17, %v124_v15  ;;  %v678_v47 = vpack.c.bf16 %v151_v42, %v147_v41  ;;  %v148_v50 = vld [vmem:[#allocation10 + $0x190] sm:$0xff]  ;;  %v710_v51 = vpack.c.bf16 %v153_v44, %v149_v43  ;;  %v155_v53 = vld [vmem:[#allocation10 + $0x1c8] sm:$0xff]  ;;  %v157_v55 = vld [vmem:[#allocation10 + $0x1d8] sm:$0xff]  ;;  %v680_v57 = vpack.c.bf16 %v150_v49, %v146_v48 }
  0x83   :  { %661 = vmatpush1.bf16.msra.mxu0 %v660_v61  ;;  %v152_v52 = vld [vmem:[#allocation10 + $0x1b0] sm:$0xff]  ;;  %v159_v54 = vld [vmem:[#allocation10 + $0x1e8] sm:$0xff]  ;;  %v161_v56 = vld [vmem:[#allocation10 + $0x1f8] sm:$0xff] }
  0x84   :  { %693 = vmatpush1.bf16.msra.mxu1 %v692_v62  ;;  %663 = vmatprep.subr.bf16.mxu0 %v662_v63  ;;  %v712_v58 = vpack.c.bf16 %v152_v52, %v148_v50  ;;  %v682_v59 = vpack.c.bf16 %v159_v54, %v155_v53  ;;  %v154_v60 = vld [vmem:[#allocation10 + $0x1c0] sm:$0xff]  ;;  %v714_v62 = vpack.c.bf16 %v161_v56, %v157_v55  ;;  %v156_v63 = vld [vmem:[#allocation10 + $0x1d0] sm:$0xff]  ;;  %v511_v8 = vld [vmem:[%s1065_s5] sm:$0xf]  ;;  %s914_s5 = smov [#allocation14]  }
  0x85   :  { %695 = vmatprep.subr.bf16.mxu1 %v694_v4  ;;  %v158_v61 = vld [vmem:[#allocation10 + $0x1e0] sm:$0xff]  ;;  %v160_v1 = vld [vmem:[#allocation10 + $0x1f0] sm:$0xff]  ;;  %v97_v4 = vld [vmem:[#allocation4] sm:$0xff]  ;;  %v524_v13 = vrot.slane %v511_v8, %v523_v9  ;;  %s575_s23 = sshll.u32 %s914_s5, 4  ;;  %s576_s23 = int_to_ptr.vmem [resolvable:$true] %s575_s23 }
  0x86   :  { %v684_v2 = vpack.c.bf16 %v158_v61, %v154_v60  ;;  %v716_v3 = vpack.c.bf16 %v160_v1, %v156_v63  ;;  %s852_s3 = scalar_lea.vmem %s576_s23, 128  ;;  %p857_p13 = scmp.lt.s32.totalorder %s576_s23, %s576_s23 }
  0x87   :  { %665 = vmatpush1.bf16.msra.mxu0 %v664_v10  ;;  %v519_v10 = vsub.s32 1, %v514_v6  ;;  %p853_p12 = scmp.ne.s32.totalorder %s576_s23, %s852_s3  ;;  %p858_p0 = scmp.lt.s32.totalorder %s852_s3, %s852_s3 }
  0x88   :  { %697 = vmatpush1.bf16.msra.mxu1 %v696_v11  ;;  %667 = vmatprep.subr.bf16.mxu0 %v666_v12  ;;  %v516_v11 = vrot.slane %v511_v8, %v515_v7  ;;  %v527_v12 = vsub.s32 3, %v514_v6 }
  0x89   :  { %699 = vmatprep.subr.bf16.mxu1 %v698_v16  ;;  %v520_v14 = vrot.slane %v511_v8, %v519_v10  ;;  %p859_p1 = por %p858_p0, %p857_p13 }
  0x8a   :  { %v528_v19 = vrot.slane %v511_v8, %v527_v12 }
  0x8b   :  { %669 = vmatpush1.bf16.msra.mxu0 %v668_v22  ;;  %p860_p2 = pnand %p859_p1, %p853_p12 }
  0x8c   :  { %701 = vmatpush1.bf16.msra.mxu1 %v700_v0  ;;  %671 = vmatprep.subr.bf16.mxu0 %v670_v23 }
  0x8d   :  { %703 = vmatprep.subr.bf16.mxu1 %v702_v27  ;;  %v95_v27 = vld [vmem:[#allocation9] sm:$0xff] }
  0x8f   :  { %673 = vmatpush1.bf16.msra.mxu0 %v672_v33 }
  0x90   :  { %705 = vmatpush1.bf16.msra.mxu1 %v704_v34  ;;  %675 = vmatprep.subr.bf16.mxu0 %v674_v35 }
  0x91   :  { %707 = vmatprep.subr.bf16.mxu1 %v706_v39 }
  0x93   :  { %677 = vmatpush1.bf16.msra.mxu0 %v676_v45 }
  0x94   :  { %709 = vmatpush1.bf16.msra.mxu1 %v708_v46  ;;  %679 = vmatprep.subr.bf16.mxu0 %v678_v47 }
  0x95   :  { %711 = vmatprep.subr.bf16.mxu1 %v710_v51 }
  0x97   :  { %681 = vmatpush1.bf16.msra.mxu0 %v680_v57 }
  0x98   :  { %713 = vmatpush1.bf16.msra.mxu1 %v712_v58  ;;  %683 = vmatprep.subr.bf16.mxu0 %v682_v59 }
  0x99   :  { %715 = vmatprep.subr.bf16.mxu1 %v714_v62 }
  0x9b   :  { %685 = vmatpush1.bf16.msra.mxu0 %v684_v2 }
  0x9c   :  { %717 = vmatpush1.bf16.msra.mxu1 %v716_v3 }
  0x9e   :  { %434 = vmatmul.mubr.f32.vlgmr.msra.gmra.mrb[0].mxu0 %v97_v4 }
  0x9f   :  { %505 = vmatmul.mubr.f32.vlgmr.msra.gmra.mrb[0].mxu1 %v97_v4 }
 0x171   :  { %v435_v15 = vpop.f32.mrb[0].mxu0 }
 0x172   :  { %v533_v16 = vadd.f32 %v516_v11, %v435_v15  ;;  %v506_v17 = vpop.f32.mrb[0].mxu1  ;;  %v437_v18 = vpop.f32.mrb[1].mxu0 }
 0x173   :  { %v535_v20 = vadd.f32 %v524_v13, %v506_v17  ;;  %v534_v21 = vadd.f32 %v520_v14, %v437_v18  ;;  %v508_v22 = vpop.f32.mrb[1].mxu1 }
 0x174   :  { %v537_v0 = vmul.f32 1.442695, %v533_v16  ;;  %v536_v24 = vadd.f32 %v528_v19, %v508_v22 }
 0x175   :  { %732 = vtanh.f32 %v535_v20  ;;  %v539_v23 = vmul.f32 1.442695, %v534_v21 }
 0x176   :  { %734 = vpow2.f32 %v537_v0  ;;  %v542_v25 = vmul.f32 0.5, %v536_v24 }
 0x177   :  { %736 = vpow2.f32 %v539_v23 }
 0x178   :  { %738 = vtanh.f32 %v542_v25 }
 0x17f   :  { %v733_v26 = vpop.eup %732 }
 0x180   :  { %v735_v28 = vpop.eup %734 }
 0x181   :  { %v737_v29 = vpop.eup %736  ;;  %v548_v30 = vmul.f32 %v735_v28, %v733_v26 }
 0x182   :  { %v547_v31 = vmul.f32 %v737_v29, %v95_v27 }
 0x184   :  { %v549_v32 = vadd.f32 %v548_v30, %v547_v31 }
 0x186   :  { %558 = vst [vmem:[#allocation14] sm:$0xff] %v549_v32  ;;  %740 = vtanh.f32 %v549_v32 }
 0x187   :  { %863 = shalt.err (!%p860_p2)
}
 0x188   :  { %s864_s16 = scalar_lea.hbm %s1067_s7, 128 }
 0x189   :  { %p865_p3 = scmp.ne.s32.totalorder %s1067_s7, %s864_s16  ;;  %p868_p4 = scmp.lt.u32.totalorder %s864_s16, %s1067_s7 }
 0x18b   :  { %p870_p5 = pnand %p868_p4, %p865_p3 }
 0x18d   :  { %873 = shalt.err (!%p870_p5)
}
 0x18e   :  { %578 = dma.vmem_to_hbm [thread:$0]  %s576_s23, 128, %s1067_s7, [#allocation15]   ;;  %v739_v33 = vpop.eup %738 }
 0x18f   :  { %v544_v34 = vadd.f32 1.0, %v739_v33  ;;  %s915_s24 = smov [#allocation13]  }
 0x190   :  { %s565_s0 = sshll.u32 %s915_s24, 4  ;;  %v741_v36 = vpop.eup %740  ;;  %s566_s0 = int_to_ptr.vmem [resolvable:$true] %s565_s0 }
 0x191   :  { %v545_v35 = vmul.f32 0.5, %v544_v34  ;;  %s874_s25 = scalar_lea.vmem %s566_s0, 128  ;;  %p879_p7 = scmp.lt.s32.totalorder %s566_s0, %s566_s0 }
 0x192   :  { %p875_p6 = scmp.ne.s32.totalorder %s566_s0, %s874_s25  ;;  %p880_p8 = scmp.lt.s32.totalorder %s874_s25, %s874_s25 }
 0x193   :  { %v551_v37 = vmul.f32 %v741_v36, %v545_v35 }
 0x194   :  { %p881_p9 = por %p880_p8, %p879_p7 }
 0x195   :  { %554 = vst [vmem:[#allocation13] sm:$0xff] %v551_v37 }
 0x196   :  { %p882_p10 = pnand %p881_p9, %p875_p6 }
 0x198   :  { %885 = shalt.err (!%p882_p10)
}
 0x199   :  { %s886_s7 = scalar_lea.hbm %s1066_s6, 128 }
 0x19a   :  { %p887_p11 = scmp.ne.s32.totalorder %s1066_s6, %s886_s7  ;;  %p890_p12 = scmp.lt.u32.totalorder %s886_s7, %s1066_s6 }
 0x19c   :  { %p892_p13 = pnand %p890_p12, %p887_p11 }
 0x19e   :  { %895 = shalt.err (!%p892_p13)
}
 0x19f   :  { %568 = dma.vmem_to_hbm [thread:$0]  %s566_s0, 128, %s1066_s6, [#allocation6]  }
 0x1a0   :  { %902 = dma.done.wait [#allocation6], 128  }
 0x1a1   :  { %903 = vsyncadd [#allocation6], 4294967168 }
 0x1a2   :  { %904 = dma.done.wait [#allocation15], 128  }
 0x1a3   :  { %905 = vsyncadd [#allocation15], 4294967168 }
 0x1a4   :  { %585 = vsyncpa [#allocation5], 1 }
 0x1a5   :  { %586 = vsyncpa [#allocation8], 1 }
 0x1a6   :  { %587 = vsyncpa [#allocation11], 1 }
 0x1a7   :  { %588 = vsyncpa [#allocation6], 1 }
 0x1a8   :  { %589 = vsyncpa [#allocation15], 1 }

</bundles_post_ra>
